<compile_context>
chip_gen: v7x
topology: tpu7x:2x2x1
jax: 0.10.0
libtpu: 0.0.40
codegen_flags: <defaults>
</compile_context>

<pallas_src>
import math

import jax
import jax.numpy as jnp
from jax.experimental import pallas as pl
from jax.experimental.pallas import tpu as pltpu

NEG_SLOPE = 0.01            # PyTorch nn.LeakyReLU default negative_slope
N_FREQS = 4                 # embedding.n_output_dims = 3 * 2 * N_FREQS = 24
WIDTH = 32                  # "width" arg of ReflectanceMlp
N_HIDDEN = 2                # "hidden" arg of ReflectanceMlp
IN_SIZE = 3 + 3 * 2 * N_FREQS          # 27
N_GROUPS = 1 + 2 * N_FREQS             # 9 feature chunks of 3 rows each
NET_ROWS = 8 * N_GROUPS                # 72: chunks stored at 8-aligned rows


def _leaky_relu(x):
    # max(x, 0.01*x) == LeakyReLU(negative_slope=0.01); mul+max instead of
    # cmp+select+mul.
    return jnp.maximum(x, NEG_SLOPE * x)


def reflectance_mlp_kernel(p_ref, w0_ref, b0_ref, wh_ref, bh_ref,
                           wf_ref, bf_ref, out_ref, net_ref):
    # Zero the packed net_in scratch.  The 5 pad rows of every 8-row group
    # must be 0 (their W0 columns are 0, but 0 * NaN-garbage = NaN).  Done per
    # step (not pl.when(program_id==0)) so it is correct when the grid axis is
    # sharded across TensorCores (per-core scratch, v7x megacore).
    net_ref[...] = jnp.zeros_like(net_ref)

    p = p_ref[...]                                       # (3, tm) f32
    net_ref[0:3, :] = p                                  # group 0: raw points

    # Base-frequency transcendentals only (EUP); higher frequencies via the
    # double-angle recurrence on the VPU: sin/cos(2^k * pi * x), k=0..3.
    s = jnp.sin(math.pi * p)
    c = jnp.cos(math.pi * p)
    for k in range(N_FREQS):                             # static unroll
        gs = 8 * (1 + 2 * k)
        gc = 8 * (2 + 2 * k)
        net_ref[gs:gs + 3, :] = s                        # 8-aligned: plain vst
        net_ref[gc:gc + 3, :] = c
        if k + 1 < N_FREQS:
            # sin(2t) = 2 sin t cos t ; cos(2t) = cos^2 t - sin^2 t
            s, c = 2.0 * s * c, c * c - s * s

    # --- nn.Linear(in_size, width) + LeakyReLU, fused into ONE matmul over
    #     the packed K=72 scratch (single result pop, no VPU accumulates) ---
    h = _leaky_relu(
        jnp.dot(w0_ref[...], net_ref[...], preferred_element_type=jnp.float32)
        + b0_ref[...])                                   # (WIDTH, tm)

    # --- hidden blocks: nn.Linear(width, width) + LeakyReLU ---
    for i in range(N_HIDDEN):                            # static unroll
        h = _leaky_relu(
            jnp.dot(wh_ref[i], h, preferred_element_type=jnp.float32)
            + bh_ref[i])

    # --- nn.Linear(width, 3) + Sigmoid ---
    out = jax.nn.sigmoid(
        jnp.dot(wf_ref[...], h, preferred_element_type=jnp.float32)
        + bf_ref[...])                                   # (3, tm)
    out_ref[...] = out.astype(out_ref.dtype)             # lane-dense store


def _full_spec(shape):
    zeros = (0,) * len(shape)
    return pl.BlockSpec(shape, lambda i, _z=zeros: _z)


def _prepare_params(params):
    """Transpose / pack weights for the point-on-lane layout."""
    w0, b0, wh, bh, wf, bf = params
    # net_in feature order: [p(3), sin_0(3), cos_0(3), sin_1(3), cos_1(3), ...]
    # Packed, zero-padded W0: columns 8g..8g+2 of group g hold that chunk's
    # weights; the remaining columns are zero (matching the scratch pad rows).
    w0p = jnp.zeros((WIDTH, NET_ROWS), jnp.float32)
    w0p = w0p.at[:, 0:3].set(jnp.transpose(w0[0:3]))
    for k in range(N_FREQS):
        gs = 8 * (1 + 2 * k)
        gc = 8 * (2 + 2 * k)
        w0p = w0p.at[:, gs:gs + 3].set(jnp.transpose(w0[3 + 6 * k: 6 + 6 * k]))
        w0p = w0p.at[:, gc:gc + 3].set(jnp.transpose(w0[6 + 6 * k: 9 + 6 * k]))
    b0_t = jnp.reshape(b0, (WIDTH, 1))
    wh_t = jnp.transpose(wh, (0, 2, 1))                  # (H, W, W)
    bh_t = jnp.transpose(bh, (0, 2, 1))                  # (H, W, 1)
    wf_t = jnp.transpose(wf)                             # (3, W)
    bf_t = jnp.reshape(bf, (3, 1))
    return w0p, b0_t, wh_t, bh_t, wf_t, bf_t


def _pick_tm(n, *, tm_max=8192, tm_min=256, min_steps=8):
    """Largest tile (amortizes ~0.35us/step overhead) that still leaves at
    least `min_steps` grid steps when n allows, so ("parallel",) semantics can
    shard the grid across the two v7x TensorCores.  Always a multiple of 256."""
    tm = tm_max
    while tm > tm_min and -(-n // tm) < min_steps:
        tm //= 2
    return tm


def reflectance_mlp_t(points_t, params, *, tm=None):
    """points_t: (3, N) f32 -> (3, N) f32.

    Transposed-layout entry point: no (N,3)<->(3,N) HBM transposes — preferred
    for large N when the caller can keep points in a (3, N) layout."""
    _, N = points_t.shape
    n = max(N, 1)
    if tm is None:
        tm = _pick_tm(n)
    n_pad = -(-n // tm) * tm

    x = points_t.astype(jnp.float32)
    if n_pad != N:
        x = jnp.pad(x, ((0, 0), (0, n_pad - N)))

    kparams = _prepare_params(params)

    out_t = pl.pallas_call(
        reflectance_mlp_kernel,
        out_shape=jax.ShapeDtypeStruct((3, n_pad), jnp.float32),
        grid_spec=pltpu.PrefetchScalarGridSpec(
            num_scalar_prefetch=0,
            grid=(n_pad // tm,),
            in_specs=[pl.BlockSpec((3, tm), lambda i: (0, i))]      # point tile
                     + [_full_spec(p.shape) for p in kparams],      # resident weights
            out_specs=pl.BlockSpec((3, tm), lambda i: (0, i)),
            scratch_shapes=[pltpu.VMEM((NET_ROWS, tm), jnp.float32)],
        ),
        compiler_params=pltpu.CompilerParams(
            dimension_semantics=("parallel",),
            vmem_limit_bytes=32 * 1024 * 1024),
    )(x, *kparams)

    return out_t[:, :N]


def reflectance_mlp(points, params, *, tm=None):
    """points: (N, 3) f32 -> (N, 3) f32 (module-compatible API).

    The two (N,3)<->(3,N) transposes here are XLA copies outside the kernel;
    callers that can keep a (3, N) layout should call reflectance_mlp_t."""
    out_t = reflectance_mlp_t(jnp.transpose(points), params, tm=tm)
    return jnp.transpose(out_t)


def reflectance_mlp_ref(points, params):
    """Pure-JAX f32 reference (direct sin/cos, explicit concatenate)."""
    w0, b0, wh, bh, wf, bf = params
    feats = [points]
    for k in range(N_FREQS):
        th = (2.0 ** k) * math.pi * points
        feats.append(jnp.sin(th))
        feats.append(jnp.cos(th))
    x = jnp.concatenate(feats, axis=-1)
    h = jnp.where(x @ w0 + b0 >= 0, x @ w0 + b0, NEG_SLOPE * (x @ w0 + b0))
    for i in range(N_HIDDEN):
        z = h @ wh[i] + bh[i]
        h = jnp.where(z >= 0, z, NEG_SLOPE * z)
    return jax.nn.sigmoid(h @ wf + bf)


def init_params(key, width=WIDTH, hidden=N_HIDDEN, in_size=IN_SIZE):
    """Deterministic init mimicking torch.nn.Linear default U(-1/sqrt(fan_in), +)."""
    def linear(k, fan_in, fan_out):
        k1, k2 = jax.random.split(k)
        bound = 1.0 / math.sqrt(fan_in)
        w = jax.random.uniform(k1, (fan_in, fan_out), jnp.float32, -bound, bound)
        b = jax.random.uniform(k2, (1, fan_out), jnp.float32, -bound, bound)
        return w, b

    keys = jax.random.split(key, hidden + 2)
    w0, b0 = linear(keys[0], in_size, width)
    whs, bhs = [], []
    for i in range(hidden):
        w, b = linear(keys[1 + i], width, width)
        whs.append(w)
        bhs.append(b)
    wh = jnp.stack(whs)                 # (hidden, width, width)
    bh = jnp.stack(bhs)                 # (hidden, 1, width)
    wf, bf = linear(keys[-1], width, 3)
    return w0, b0, wh, bh, wf, bf


if __name__ == "__main__":
    key = jax.random.PRNGKey(0)
    k_params, k_pts = jax.random.split(key)

    params = init_params(k_params)
    N = 2000                             # ragged -> exercises padding, 8 grid steps
    points = jax.random.uniform(k_pts, (N, 3), jnp.float32)

    fwd = jax.jit(reflectance_mlp)
    out = jax.block_until_ready(fwd(points, params))

    assert out.shape == (N, 3) and out.dtype == jnp.float32
    assert bool(jnp.all(jnp.isfinite(out)))
    assert bool(jnp.all((out >= 0.0) & (out <= 1.0)))    # sigmoid range

    ref = reflectance_mlp_ref(points, params)
    assert bool(jnp.allclose(out, ref, atol=1e-3, rtol=1e-3))

    # Transposed-layout entry point (no wrapper HBM transposes) agrees too.
    out_t = jax.block_until_ready(reflectance_mlp_t(jnp.transpose(points), params))
    assert bool(jnp.allclose(jnp.transpose(out_t), ref, atol=1e-3, rtol=1e-3))

    print("KERNEL_OK")
</pallas_src>

<mosaic_0001>
module attributes {stable_mosaic.version = 11 : i64} {
  func.func @reflectance_mlp_kernel(%arg0: i32, %arg1: memref<3x256xf32, #tpu.memory_space<vmem>>, %arg2: memref<32x72xf32, #tpu.memory_space<vmem>>, %arg3: memref<32x1xf32, #tpu.memory_space<vmem>>, %arg4: memref<2x32x32xf32, #tpu.memory_space<vmem>>, %arg5: memref<2x32x1xf32, #tpu.memory_space<vmem>>, %arg6: memref<3x32xf32, #tpu.memory_space<vmem>>, %arg7: memref<3x1xf32, #tpu.memory_space<vmem>>, %arg8: memref<3x256xf32, #tpu.memory_space<vmem>>, %arg9: memref<72x256xf32, #tpu.memory_space<vmem>>) attributes {dimension_semantics = [#tpu.dimension_semantics<parallel>], iteration_bounds = array<i64: 8>, scalar_prefetch = 0 : i64, scratch_operands = 1 : i64, tpu.core_type = #tpu.core_type<tc>, window_params = [{transform_indices = @transform_0, window_bounds = array<i64: 3, 256>}, {pipeline_mode = #tpu.pipeline_mode<synchronous>, transform_indices = @transform_1, window_bounds = array<i64: 32, 72>}, {pipeline_mode = #tpu.pipeline_mode<synchronous>, transform_indices = @transform_2, window_bounds = array<i64: 32, 1>}, {pipeline_mode = #tpu.pipeline_mode<synchronous>, transform_indices = @transform_3, window_bounds = array<i64: 2, 32, 32>}, {pipeline_mode = #tpu.pipeline_mode<synchronous>, transform_indices = @transform_4, window_bounds = array<i64: 2, 32, 1>}, {pipeline_mode = #tpu.pipeline_mode<synchronous>, transform_indices = @transform_5, window_bounds = array<i64: 3, 32>}, {pipeline_mode = #tpu.pipeline_mode<synchronous>, transform_indices = @transform_6, window_bounds = array<i64: 3, 1>}, {transform_indices = @transform_7, window_bounds = array<i64: 3, 256>}]} {
    %cst = arith.constant 0.000000e+00 : f32
    %0 = vector.broadcast %cst : f32 to vector<72x256xf32>
    %c0 = arith.constant 0 : index
    %c0_0 = arith.constant 0 : index
    %1 = vector.load %arg9[%c0, %c0_0] : memref<72x256xf32, #tpu.memory_space<vmem>>, vector<72x256xf32>
    tpu.vector_store %arg9[%c0, %c0_0], %0 {strides = array<i32>} : memref<72x256xf32, #tpu.memory_space<vmem>>, vector<72x256xf32>,
    %c0_1 = arith.constant 0 : index
    %c0_2 = arith.constant 0 : index
    %2 = vector.load %arg1[%c0_1, %c0_2] : memref<3x256xf32, #tpu.memory_space<vmem>>, vector<3x256xf32>
    %c0_3 = arith.constant 0 : index
    %c0_4 = arith.constant 0 : index
    %3 = vector.load %arg9[%c0_3, %c0_4] : memref<72x256xf32, #tpu.memory_space<vmem>>, vector<3x256xf32>
    tpu.vector_store %arg9[%c0_3, %c0_4], %2 {strides = array<i32>} : memref<72x256xf32, #tpu.memory_space<vmem>>, vector<3x256xf32>,
    %cst_5 = arith.constant 3.14159274 : f32
    %4 = vector.broadcast %cst_5 : f32 to vector<3x256xf32>
    %5 = arith.mulf %4, %2 : vector<3x256xf32>
    %6 = math.sin %5 : vector<3x256xf32>
    %cst_6 = arith.constant 3.14159274 : f32
    %7 = vector.broadcast %cst_6 : f32 to vector<3x256xf32>
    %8 = arith.mulf %7, %2 : vector<3x256xf32>
    %9 = math.cos %8 : vector<3x256xf32>
    %c8 = arith.constant 8 : index
    %c0_7 = arith.constant 0 : index
    %10 = vector.load %arg9[%c8, %c0_7] : memref<72x256xf32, #tpu.memory_space<vmem>>, vector<3x256xf32>
    tpu.vector_store %arg9[%c8, %c0_7], %6 {strides = array<i32>} : memref<72x256xf32, #tpu.memory_space<vmem>>, vector<3x256xf32>,
    %c16 = arith.constant 16 : index
    %c0_8 = arith.constant 0 : index
    %11 = vector.load %arg9[%c16, %c0_8] : memref<72x256xf32, #tpu.memory_space<vmem>>, vector<3x256xf32>
    tpu.vector_store %arg9[%c16, %c0_8], %9 {strides = array<i32>} : memref<72x256xf32, #tpu.memory_space<vmem>>, vector<3x256xf32>,
    %cst_9 = arith.constant 2.000000e+00 : f32
    %12 = vector.broadcast %cst_9 : f32 to vector<3x256xf32>
    %13 = arith.mulf %12, %6 : vector<3x256xf32>
    %14 = arith.mulf %13, %9 : vector<3x256xf32>
    %15 = arith.mulf %9, %9 : vector<3x256xf32>
    %16 = arith.mulf %6, %6 : vector<3x256xf32>
    %17 = arith.subf %15, %16 : vector<3x256xf32>
    %c24 = arith.constant 24 : index
    %c0_10 = arith.constant 0 : index
    %18 = vector.load %arg9[%c24, %c0_10] : memref<72x256xf32, #tpu.memory_space<vmem>>, vector<3x256xf32>
    tpu.vector_store %arg9[%c24, %c0_10], %14 {strides = array<i32>} : memref<72x256xf32, #tpu.memory_space<vmem>>, vector<3x256xf32>,
    %c32 = arith.constant 32 : index
    %c0_11 = arith.constant 0 : index
    %19 = vector.load %arg9[%c32, %c0_11] : memref<72x256xf32, #tpu.memory_space<vmem>>, vector<3x256xf32>
    tpu.vector_store %arg9[%c32, %c0_11], %17 {strides = array<i32>} : memref<72x256xf32, #tpu.memory_space<vmem>>, vector<3x256xf32>,
    %cst_12 = arith.constant 2.000000e+00 : f32
    %20 = vector.broadcast %cst_12 : f32 to vector<3x256xf32>
    %21 = arith.mulf %20, %14 : vector<3x256xf32>
    %22 = arith.mulf %21, %17 : vector<3x256xf32>
    %23 = arith.mulf %17, %17 : vector<3x256xf32>
    %24 = arith.mulf %14, %14 : vector<3x256xf32>
    %25 = arith.subf %23, %24 : vector<3x256xf32>
    %c40 = arith.constant 40 : index
    %c0_13 = arith.constant 0 : index
    %26 = vector.load %arg9[%c40, %c0_13] : memref<72x256xf32, #tpu.memory_space<vmem>>, vector<3x256xf32>
    tpu.vector_store %arg9[%c40, %c0_13], %22 {strides = array<i32>} : memref<72x256xf32, #tpu.memory_space<vmem>>, vector<3x256xf32>,
    %c48 = arith.constant 48 : index
    %c0_14 = arith.constant 0 : index
    %27 = vector.load %arg9[%c48, %c0_14] : memref<72x256xf32, #tpu.memory_space<vmem>>, vector<3x256xf32>
    tpu.vector_store %arg9[%c48, %c0_14], %25 {strides = array<i32>} : memref<72x256xf32, #tpu.memory_space<vmem>>, vector<3x256xf32>,
    %cst_15 = arith.constant 2.000000e+00 : f32
    %28 = vector.broadcast %cst_15 : f32 to vector<3x256xf32>
    %29 = arith.mulf %28, %22 : vector<3x256xf32>
    %30 = arith.mulf %29, %25 : vector<3x256xf32>
    %31 = arith.mulf %25, %25 : vector<3x256xf32>
    %32 = arith.mulf %22, %22 : vector<3x256xf32>
    %33 = arith.subf %31, %32 : vector<3x256xf32>
    %c56 = arith.constant 56 : index
    %c0_16 = arith.constant 0 : index
    %34 = vector.load %arg9[%c56, %c0_16] : memref<72x256xf32, #tpu.memory_space<vmem>>, vector<3x256xf32>
    tpu.vector_store %arg9[%c56, %c0_16], %30 {strides = array<i32>} : memref<72x256xf32, #tpu.memory_space<vmem>>, vector<3x256xf32>,
    %c64 = arith.constant 64 : index
    %c0_17 = arith.constant 0 : index
    %35 = vector.load %arg9[%c64, %c0_17] : memref<72x256xf32, #tpu.memory_space<vmem>>, vector<3x256xf32>
    tpu.vector_store %arg9[%c64, %c0_17], %33 {strides = array<i32>} : memref<72x256xf32, #tpu.memory_space<vmem>>, vector<3x256xf32>,
    %c0_18 = arith.constant 0 : index
    %c0_19 = arith.constant 0 : index
    %36 = vector.load %arg2[%c0_18, %c0_19] : memref<32x72xf32, #tpu.memory_space<vmem>>, vector<32x72xf32>
    %c0_20 = arith.constant 0 : index
    %c0_21 = arith.constant 0 : index
    %37 = vector.load %arg9[%c0_20, %c0_21] : memref<72x256xf32, #tpu.memory_space<vmem>>, vector<72x256xf32>
    %cst_22 = arith.constant dense<0.000000e+00> : vector<32x256xf32>
    %38 = tpu.matmul %36, %37, %cst_22 {dimension_numbers = #tpu.dot_dimension_numbers<[1], [0], [0], [1], [0, 0, 1, 1], [], []>} : vector<32x72xf32>, vector<72x256xf32>, vector<32x256xf32> -> vector<32x256xf32>
    %c0_23 = arith.constant 0 : index
    %c0_24 = arith.constant 0 : index
    %39 = vector.load %arg3[%c0_23, %c0_24] : memref<32x1xf32, #tpu.memory_space<vmem>>, vector<32x1xf32>
    %40 = vector.broadcast %39 : vector<32x1xf32> to vector<32x256xf32>
    %41 = arith.addf %38, %40 : vector<32x256xf32>
    %cst_25 = arith.constant 0.00999999977 : f32
    %42 = vector.broadcast %cst_25 : f32 to vector<32x256xf32>
    %43 = arith.mulf %42, %41 : vector<32x256xf32>
    %44 = arith.maximumf %41, %43 : vector<32x256xf32>
    %c0_26 = arith.constant 0 : index
    %c0_27 = arith.constant 0 : index
    %c0_28 = arith.constant 0 : index
    %45 = vector.load %arg4[%c0_26, %c0_27, %c0_28] : memref<2x32x32xf32, #tpu.memory_space<vmem>>, vector<1x32x32xf32>
    %46 = vector.shape_cast %45 : vector<1x32x32xf32> to vector<32x32xf32>
    %cst_29 = arith.constant dense<0.000000e+00> : vector<32x256xf32>
    %47 = tpu.matmul %46, %44, %cst_29 {dimension_numbers = #tpu.dot_dimension_numbers<[1], [0], [0], [1], [0, 0, 1, 1], [], []>} : vector<32x32xf32>, vector<32x256xf32>, vector<32x256xf32> -> vector<32x256xf32>
    %c0_30 = arith.constant 0 : index
    %c0_31 = arith.constant 0 : index
    %c0_32 = arith.constant 0 : index
    %48 = vector.load %arg5[%c0_30, %c0_31, %c0_32] : memref<2x32x1xf32, #tpu.memory_space<vmem>>, vector<1x32x1xf32>
    %49 = vector.shape_cast %48 : vector<1x32x1xf32> to vector<32x1xf32>
    %50 = vector.broadcast %49 : vector<32x1xf32> to vector<32x256xf32>
    %51 = arith.addf %47, %50 : vector<32x256xf32>
    %cst_33 = arith.constant 0.00999999977 : f32
    %52 = vector.broadcast %cst_33 : f32 to vector<32x256xf32>
    %53 = arith.mulf %52, %51 : vector<32x256xf32>
    %54 = arith.maximumf %51, %53 : vector<32x256xf32>
    %c1 = arith.constant 1 : index
    %c0_34 = arith.constant 0 : index
    %c0_35 = arith.constant 0 : index
    %55 = vector.load %arg4[%c1, %c0_34, %c0_35] : memref<2x32x32xf32, #tpu.memory_space<vmem>>, vector<1x32x32xf32>
    %56 = vector.shape_cast %55 : vector<1x32x32xf32> to vector<32x32xf32>
    %cst_36 = arith.constant dense<0.000000e+00> : vector<32x256xf32>
    %57 = tpu.matmul %56, %54, %cst_36 {dimension_numbers = #tpu.dot_dimension_numbers<[1], [0], [0], [1], [0, 0, 1, 1], [], []>} : vector<32x32xf32>, vector<32x256xf32>, vector<32x256xf32> -> vector<32x256xf32>
    %c1_37 = arith.constant 1 : index
    %c0_38 = arith.constant 0 : index
    %c0_39 = arith.constant 0 : index
    %58 = vector.load %arg5[%c1_37, %c0_38, %c0_39] : memref<2x32x1xf32, #tpu.memory_space<vmem>>, vector<1x32x1xf32>
    %59 = vector.shape_cast %58 : vector<1x32x1xf32> to vector<32x1xf32>
    %60 = vector.broadcast %59 : vector<32x1xf32> to vector<32x256xf32>
    %61 = arith.addf %57, %60 : vector<32x256xf32>
    %cst_40 = arith.constant 0.00999999977 : f32
    %62 = vector.broadcast %cst_40 : f32 to vector<32x256xf32>
    %63 = arith.mulf %62, %61 : vector<32x256xf32>
    %64 = arith.maximumf %61, %63 : vector<32x256xf32>
    %c0_41 = arith.constant 0 : index
    %c0_42 = arith.constant 0 : index
    %65 = vector.load %arg6[%c0_41, %c0_42] : memref<3x32xf32, #tpu.memory_space<vmem>>, vector<3x32xf32>
    %cst_43 = arith.constant dense<0.000000e+00> : vector<3x256xf32>
    %66 = tpu.matmul %65, %64, %cst_43 {dimension_numbers = #tpu.dot_dimension_numbers<[1], [0], [0], [1], [0, 0, 1, 1], [], []>} : vector<3x32xf32>, vector<32x256xf32>, vector<3x256xf32> -> vector<3x256xf32>
    %c0_44 = arith.constant 0 : index
    %c0_45 = arith.constant 0 : index
    %67 = vector.load %arg7[%c0_44, %c0_45] : memref<3x1xf32, #tpu.memory_space<vmem>>, vector<3x1xf32>
    %68 = vector.broadcast %67 : vector<3x1xf32> to vector<3x256xf32>
    %69 = arith.addf %66, %68 : vector<3x256xf32>
    %70 = arith.negf %69 : vector<3x256xf32>
    %71 = math.exp %70 : vector<3x256xf32>
    %cst_46 = arith.constant 1.000000e+00 : f32
    %72 = vector.broadcast %cst_46 : f32 to vector<3x256xf32>
    %73 = arith.addf %72, %71 : vector<3x256xf32>
    %74 = arith.divf %72, %73 : vector<3x256xf32>
    %c0_47 = arith.constant 0 : index
    %c0_48 = arith.constant 0 : index
    %75 = vector.load %arg8[%c0_47, %c0_48] : memref<3x256xf32, #tpu.memory_space<vmem>>, vector<3x256xf32>
    tpu.vector_store %arg8[%c0_47, %c0_48], %74 {strides = array<i32>} : memref<3x256xf32, #tpu.memory_space<vmem>>, vector<3x256xf32>,
    return
  }
  func.func @transform_0(%arg0: i32) -> (i32, i32) {
    %c0_i32 = arith.constant 0 : i32
    %c0_i32_0 = arith.constant 0 : i32
    return %c0_i32, %arg0 : i32, i32
  }
  func.func @transform_1(%arg0: i32) -> (i32, i32) {
    %c0_i32 = arith.constant 0 : i32
    %c0_i32_0 = arith.constant 0 : i32
    %c0_i32_1 = arith.constant 0 : i32
    return %c0_i32, %c0_i32_0 : i32, i32
  }
  func.func @transform_2(%arg0: i32) -> (i32, i32) {
    %c0_i32 = arith.constant 0 : i32
    %c0_i32_0 = arith.constant 0 : i32
    %c0_i32_1 = arith.constant 0 : i32
    return %c0_i32, %c0_i32_0 : i32, i32
  }
  func.func @transform_3(%arg0: i32) -> (i32, i32, i32) {
    %c0_i32 = arith.constant 0 : i32
    %c0_i32_0 = arith.constant 0 : i32
    %c0_i32_1 = arith.constant 0 : i32
    %c0_i32_2 = arith.constant 0 : i32
    return %c0_i32, %c0_i32_0, %c0_i32_1 : i32, i32, i32
  }
  func.func @transform_4(%arg0: i32) -> (i32, i32, i32) {
    %c0_i32 = arith.constant 0 : i32
    %c0_i32_0 = arith.constant 0 : i32
    %c0_i32_1 = arith.constant 0 : i32
    %c0_i32_2 = arith.constant 0 : i32
    return %c0_i32, %c0_i32_0, %c0_i32_1 : i32, i32, i32
  }
  func.func @transform_5(%arg0: i32) -> (i32, i32) {
    %c0_i32 = arith.constant 0 : i32
    %c0_i32_0 = arith.constant 0 : i32
    %c0_i32_1 = arith.constant 0 : i32
    return %c0_i32, %c0_i32_0 : i32, i32
  }
  func.func @transform_6(%arg0: i32) -> (i32, i32) {
    %c0_i32 = arith.constant 0 : i32
    %c0_i32_0 = arith.constant 0 : i32
    %c0_i32_1 = arith.constant 0 : i32
    return %c0_i32, %c0_i32_0 : i32, i32
  }
  func.func @transform_7(%arg0: i32) -> (i32, i32) {
    %c0_i32 = arith.constant 0 : i32
    %c0_i32_0 = arith.constant 0 : i32
    return %c0_i32, %arg0 : i32, i32
  }
}

</mosaic_0001>

<bundles_post_ra>
// kernel: reflectance_mlp.1
= control target key start
LH: loop header
LB: loop body
LE: loop exit
PB: predicated region body
PF: predicated region fallthrough
CT: control target
= control target key end

     0   :  { %s1353_s24 = smov 0   ;;  %s1523_s0 = inlined_call_operand.vmem [shape: f32[3,2048], index: 0, kind: input, shape index: {}]   ;;  %s1524_s1 = inlined_call_operand.vmem [shape: f32[32,72], index: 1, kind: input, shape index: {}]   ;;  %s1525_s2 = inlined_call_operand.vmem [shape: f32[32,1], index: 2, kind: input, shape index: {}]   ;;  %s1526_s3 = inlined_call_operand.vmem [shape: f32[2,32,32], index: 3, kind: input, shape index: {}]   ;;  %s1527_s4 = inlined_call_operand.vmem [shape: f32[2,32,1], index: 4, kind: input, shape index: {}]   ;;  %s1528_s5 = inlined_call_operand.vmem [shape: f32[3,32], index: 5, kind: input, shape index: {}]   ;;  %s1529_s6 = inlined_call_operand.vmem [shape: f32[3,1], index: 6, kind: input, shape index: {}]   ;;  %s1530_s7 = inlined_call_operand.vmem [shape: f32[3,2048], index: 7, kind: output, shape index: {}]  }
   0x1 LB: > { %s1180_s25 = sadd.s32 4294967295, %s1303_s24   ;;  %p1184_p0 = scmp.ge.s32.totalorder %s1303_s24, 1  ;;  %s1303_s24 = sphi %s1353_s24, %s17_s24  }
   0x2   : > { %p238_p1 = scmp.lt.s32.totalorder %s1303_s24, 9 }
   0x4   : > { %p239_p2 = pnand %p1184_p0, %p238_p1 }
   0x5   : > { %s1185_s26 = sshll.u32 (!%p239_p2), %s1180_s25, 1  ;;  %v1305_v0 = vmov (!%p239_p2), 0.0   ;;  %v591_v1 = vld [vmem:[%s1525_s2] sm:$0xff] (!%p239_p2)  ;;  %v593_v2 = vld [vmem:[%s1525_s2 + $0x10] sm:$0xff] (!%p239_p2)  ;;  %v1306_v4 = vmov (!%p239_p2), 0   ;;  %v592_v7 = vld [vmem:[%s1525_s2 + $0x8] sm:$0xff] (!%p239_p2) }
   0x6   : > { %242 = sbr.rel (%p239_p2) target bundleno = 1084 (0x43c), region = 48  ;;  %p271_p3 = scmp.lt.s32.totalorder (!%p239_p2), %s1185_s26, 15  ;;  %283 = vst [vmem:[#allocation2 + $0x8] sm:$0xff] (!%p239_p2), %v1305_v0  ;;  %285 = vst [vmem:[#allocation2 + $0x18] sm:$0xff] (!%p239_p2), %v1305_v0  ;;  %692 = vmatprep.mubr.f32.mxu0 (!%p239_p2), %v1305_v0  ;;  %838 = vmatprep.mubr.f32.mxu1 (!%p239_p2), %v1305_v0  ;;  %v594_v8 = vld [vmem:[%s1525_s2 + $0x18] sm:$0xff] (!%p239_p2)  ;;  %v737_v12 = vld [vmem:[%s1527_s4] sm:$0xff] (!%p239_p2) }
   0x7   : > { %282 = vst [vmem:[#allocation2] sm:$0xff] (!%p239_p2), %v1305_v0  ;;  %284 = vst [vmem:[#allocation2 + $0x10] sm:$0xff] (!%p239_p2), %v1305_v0  ;;  %1282 = vset.pattern.permute.xlu0 (!%p239_p2), %v1306_v4  ;;  %1283 = vset.pattern.permute.xlu1 (!%p239_p2), %v1306_v4  ;;  %v738_v13 = vld [vmem:[%s1527_s4 + $0x8] sm:$0xff] (!%p239_p2)  ;;  %v739_v17 = vld [vmem:[%s1527_s4 + $0x10] sm:$0xff] (!%p239_p2)  ;;  %v1307_v25 = vmov (!%p239_p2), 683565275  }
   0x8   : > { %286 = vst [vmem:[#allocation2 + $0x20] sm:$0xff] (!%p239_p2), %v1305_v0  ;;  %287 = vst [vmem:[#allocation2 + $0x28] sm:$0xff] (!%p239_p2), %v1305_v0  ;;  %597 = vperm.xlu0 (!%p239_p2), %1282, %v591_v1   ;;  %607 = vperm.xlu1 (!%p239_p2), %1283, %v593_v2   ;;  %v740_v18 = vld [vmem:[%s1527_s4 + $0x18] sm:$0xff] (!%p239_p2)  ;;  %v1209_v23 = vld [vmem:[%s1527_s4 + $0x20] sm:$0xff] (!%p239_p2)  ;;  %v1308_v27 = vmov (!%p239_p2), 2475754826  }
   0x9   : > { %288 = vst [vmem:[#allocation2 + $0x30] sm:$0xff] (!%p239_p2), %v1305_v0  ;;  %289 = vst [vmem:[#allocation2 + $0x38] sm:$0xff] (!%p239_p2), %v1305_v0  ;;  %v1309_v29 = vmov (!%p239_p2), 2131351028   ;;  %v1210_v31 = vld [vmem:[%s1527_s4 + $0x28] sm:$0xff] (!%p239_p2)  ;;  %v1211_v44 = vld [vmem:[%s1527_s4 + $0x30] sm:$0xff] (!%p239_p2) }
   0xa   : > { %290 = vst [vmem:[#allocation2 + $0x40] sm:$0xff] (!%p239_p2), %v1305_v0  ;;  %291 = vst [vmem:[#allocation2 + $0x48] sm:$0xff] (!%p239_p2), %v1305_v0  ;;  %v1310_v32 = vmov (!%p239_p2), 2102212464   ;;  %v1311_v34 = vmov (!%p239_p2), 920167782  }
   0xb   : > { %292 = vst [vmem:[#allocation2 + $0x50] sm:$0xff] (!%p239_p2), %v1305_v0  ;;  %293 = vst [vmem:[#allocation2 + $0x58] sm:$0xff] (!%p239_p2), %v1305_v0  ;;  %v1312_v41 = vmov (!%p239_p2), 1326507024   ;;  %v1212_v48 = vld [vmem:[%s1527_s4 + $0x38] sm:$0xff] (!%p239_p2) }
   0xc   : > { %294 = vst [vmem:[#allocation2 + $0x60] sm:$0xff] (!%p239_p2), %v1305_v0  ;;  %295 = vst [vmem:[#allocation2 + $0x68] sm:$0xff] (!%p239_p2), %v1305_v0  ;;  %602 = vperm.xlu0 (!%p239_p2), %1282, %v592_v7   ;;  %612 = vperm.xlu1 (!%p239_p2), %1283, %v594_v8   ;;  %v1027_v58 = vld [vmem:[%s1529_s6] sm:$0x7] (!%p239_p2) }
   0xd   : > { %296 = vst [vmem:[#allocation2 + $0x70] sm:$0xff] %v1305_v0  ;;  %297 = vst [vmem:[#allocation2 + $0x78] sm:$0xff] %v1305_v0  ;;  %s1532_s26 = smov (!%p271_p3, %s1185_s26), 15 }
   0xe   : > { %298 = vst [vmem:[#allocation2 + $0x80] sm:$0xff] %v1305_v0  ;;  %299 = vst [vmem:[#allocation2 + $0x88] sm:$0xff] %v1305_v0  ;;  %s1186_s27 = sshll.u32 %s1532_s26, 2 }
   0xf   : > { %s274_s30 = scalar_lea.vmem %s1523_s0, %s1186_s27  ;;  %s280_s22 = scalar_lea.vmem %s1530_s7, %s1186_s27 }
  0x10   : > { %v300_v3 = vld [vmem:[%s274_s30] sm:$0x77]  ;;  %743 = vperm.xlu0 %1282, %v737_v12   ;;  %748 = vperm.xlu1 %1283, %v738_v13  }
  0x11   : > { %v302_v5 = vcombine.high %v300_v3, %v300_v3  ;;  %v1396_v6 = vmul.f32 3.1415927, %v300_v3  ;;  %304 = vst [vmem:[#allocation2] sm:$0x7] %v300_v3 }
  0x13   : > { %305 = vst [vmem:[#allocation2 + $0x8] sm:$0x7] %v302_v5  ;;  %v310_v9 = vand.u32 2139095040, %v1396_v6  ;;  %v307_v11 = vand.u32 2147483647, %v1396_v6  ;;  %vm309_vm7 = vcmp.lt.s32.totalorder %v1396_v6, 0  ;;  %vm399_vm15 = vweird.f32 %v1396_v6 }
  0x14   : > { %753 = vperm.xlu0 %1282, %v739_v17   ;;  %758 = vperm.xlu1 %1283, %v740_v18  }
  0x15   : > { %v311_v10 = vshrl.u32 %v310_v9, 23  ;;  %v314_v16 = vand.u32 8388607, %v307_v11  ;;  %vm308_vm8 = vcmp.le.f32.partialorder %v307_v11, 0.7853982 }
  0x17   : > { %v1189_v14 = vadd.s32 4294967169, %v311_v10  ;;  %v315_v21 = vor.u32 8388608, %v314_v16 }
  0x18   : > { %891 = vperm.xlu0 %1282, %v1209_v23   ;;  %896 = vperm.xlu1 %1283, %v1210_v31  }
  0x19   : > { %v317_v15 = vadd.s32 1, %v1189_v14  ;;  %v355_v43 = vshll.u32 %v315_v21, 8 }
  0x1b   : > { %vm318_vm0 = vcmp.gt.s32.totalorder %v317_v15, 0 }
  0x1c   : > { %v319_v19 = vsel %vm318_vm0, %v317_v15, 0  ;;  %901 = vperm.xlu0 %1282, %v1211_v44   ;;  %906 = vperm.xlu1 %1283, %v1212_v48   ;;  %vm615_vm0 = vcmask 588800  }
  0x1d   : > { %v321_v20 = vand.u32 31, %v319_v19  ;;  %v320_v22 = vshrl.u32 %v319_v19, 5 }
  0x1f   : > { %v322_v24 = vsub.s32 32, %v321_v20  ;;  %v324_v26 = vshll.u32 %v1307_v25, %v321_v20  ;;  %v327_v28 = vshll.u32 %v1308_v27, %v321_v20  ;;  %v330_v30 = vshll.u32 %v1309_v29, %v321_v20 }
  0x20   : > { %v333_v33 = vshll.u32 %v1310_v32, %v321_v20  ;;  %v336_v35 = vshll.u32 %v1311_v34, %v321_v20  ;;  %vm339_vm1 = vcmp.lt.s32.totalorder %v320_v22, 1  ;;  %vm342_vm2 = vcmp.lt.s32.totalorder %v320_v22, 4  ;;  %1030 = vperm.xlu0 %1282, %v1027_v58  }
  0x21   : > { %v323_v36 = vshrl.u32 %v1307_v25, %v322_v24  ;;  %v325_v37 = vshrl.u32 %v1308_v27, %v322_v24  ;;  %v328_v38 = vshrl.u32 %v1309_v29, %v322_v24  ;;  %v331_v39 = vshrl.u32 %v1310_v32, %v322_v24 }
  0x22   : > { %v334_v40 = vshrl.u32 %v1311_v34, %v322_v24  ;;  %v337_v42 = vshrl.u32 %v1312_v41, %v322_v24  ;;  %vm340_vm3 = vcmp.lt.s32.totalorder %v320_v22, 2  ;;  %vm341_vm4 = vcmp.lt.s32.totalorder %v320_v22, 3 }
  0x23   : > { %v326_v45 = vor.u32 %v325_v37, %v324_v26  ;;  %v329_v46 = vor.u32 %v328_v38, %v327_v28  ;;  %v332_v47 = vor.u32 %v331_v39, %v330_v30 }
  0x24   : > { %v335_v49 = vor.u32 %v334_v40, %v333_v33  ;;  %v338_v50 = vor.u32 %v337_v42, %v336_v35 }
  0x25   : > { %v343_v51 = vsel %vm339_vm1, %v323_v36, %v326_v45  ;;  %v344_v52 = vsel %vm342_vm2, %v332_v47, 2102212464  ;;  %v347_v53 = vsel %vm339_vm1, %v326_v45, %v329_v46  ;;  %v351_v54 = vsel %vm339_vm1, %v329_v46, %v332_v47 }
  0x26   : > { %v345_v55 = vsel %vm341_vm4, %v329_v46, %v344_v52  ;;  %v348_v56 = vsel %vm342_vm2, %v335_v49, 920167782  ;;  %v352_v57 = vsel %vm342_vm2, %v338_v50, 1326507024  ;;  %vm761_vm1 = vcmask 261120  }
  0x27   : > { %v349_v59 = vsel %vm341_vm4, %v332_v47, %v348_v56  ;;  %v353_v60 = vsel %vm341_vm4, %v335_v49, %v352_v57  ;;  %v346_v61 = vsel %vm340_vm3, %v343_v51, %v345_v55 }
  0x28   : > { %v350_v62 = vsel %vm340_vm3, %v347_v53, %v349_v59  ;;  %v354_v63 = vsel %vm340_vm3, %v351_v54, %v353_v60  ;;  %v362_v5 = vmul.u32 %v355_v43, %v346_v61 }
  0x29   : > { %v1441_v1 = vmul.u32.u64.low %v355_v43, %v354_v63  ;;  %v1442_v2 = vmul.u32.u64.high %v355_v43, %v354_v63, %v1441_v1  ;;  %v1444_v3 = vmul.u32.u64.low %v355_v43, %v350_v62  ;;  %v1445_v4 = vmul.u32.u64.high %v355_v43, %v350_v62, %v1444_v3  ;;  %v573_v63 = vld [vmem:[#allocation2] sm:$0xff] }
  0x2b   : > { %vm364_vm5 = vc.u32 %v1442_v2, %v1444_v3  ;;  %v365_v7 = vadd.s32 1, %v1445_v4  ;;  %v363_v19 = vadd.s32 %v1444_v3, %v1442_v2  ;;  %v574_v2 = vld [vmem:[#allocation2 + $0x8] sm:$0xff] }
  0x2d   : > { %v366_v8 = vsel %vm364_vm5, %v365_v7, %v1445_v4 }
  0x2e   : > { %v367_v9 = vadd.s32 %v366_v8, %v362_v5 }
  0x30   : > { %v368_v10 = vadd.s32 536870912, %v367_v9 }
  0x32   : > { %v369_v12 = vshrl.u32 %v368_v10, 30 }
  0x34   : > { %v370_v13 = vshll.u32 %v369_v12, 30  ;;  %v393_v31 = vsub.s32 4, %v369_v12 }
  0x36   : > { %v371_v14 = vsub.s32 %v367_v9, %v370_v13  ;;  %v394_v34 = vsel %vm309_vm7, %v393_v31, %v369_v12 }
  0x37   : > { %v396_v37 = vsel %vm308_vm8, 0, %v394_v34 }
  0x38   : > { %v373_v15 = vsub.s32 0, %v371_v14  ;;  %v400_v38 = vadd.s32 3, %v396_v37  ;;  %v504_v40 = vand.u32 3, %v396_v37 }
  0x3a   : > { %v1190_v16 = vmin.u32 %v373_v15, %v371_v14  ;;  %v401_v39 = vand.u32 3, %v400_v38  ;;  %vm509_vm10 = vcmp.eq.s32.totalorder %v504_v40, 2  ;;  %vm506_vm12 = vcmp.eq.s32.totalorder %v504_v40, 0 }
  0x3b   : > { %vm505_vm14 = vcmp.lt.s32.totalorder %v504_v40, 2  ;;  %v570_v40 = vld [vmem:[%s1524_s1 + $0x8] sm:$0xff] }
  0x3c   : > { %v375_v17 = vclz %v1190_v16  ;;  %vm406_vm9 = vcmp.eq.s32.totalorder %v401_v39, 2  ;;  %vm403_vm11 = vcmp.eq.s32.totalorder %v401_v39, 0  ;;  %vm402_vm13 = vcmp.lt.s32.totalorder %v401_v39, 2  ;;  %v569_v39 = vld [vmem:[%s1524_s1] sm:$0xff] }
  0x3e   : > { %v1191_v18 = vadd.s32 4294967294, %v375_v17 }
  0x40   : > { %vm1192_vm6 = vcmp.lt.s32.totalorder %v1191_v18, 0 }
  0x41   : > { %v378_v20 = vsel %vm1192_vm6, 0, %v1191_v18 }
  0x42   : > { %v379_v21 = vsub.s32 32, %v378_v20  ;;  %v380_v22 = vshll.u32 %v371_v14, %v378_v20  ;;  %v383_v23 = vsub.s32 4294967266, %v378_v20 }
  0x44   : > { %v381_v24 = vshrl.u32 %v363_v19, %v379_v21  ;;  %v384_v25 = vadd.s32 127, %v383_v23 }
  0x46   : > { %v382_v26 = vor.u32 %v381_v24, %v380_v22  ;;  %v385_v27 = vshll.u32 %v384_v25, 23 }
  0x48   : > { %v386_v28 = vor.u32 4788187, %v385_v27  ;;  %v389_v29 = vcvt.s32.f32 %v382_v26 }
  0x4a   : > { %v387_v30 = vand.u32 2147483647, %v386_v28 }
  0x4c   : > { %v390_v32 = vmul.f32 %v389_v29, %v387_v30 }
  0x4e   : > { %v391_v33 = vxor.u32 2147483648, %v390_v32 }
  0x50   : > { %v392_v35 = vsel %vm309_vm7, %v391_v33, %v390_v32 }
  0x51   : > { %v395_v36 = vsel %vm308_vm8, %v1396_v6, %v392_v35 }
  0x52   : > { %1285 = vcosq.f32 %v395_v36 }
  0x53   : > { %1287 = vsinq.f32 %v395_v36 }
  0x5c   : > { %v1286_v41 = vpop.eup %1285 }
  0x5d   : > { %v1288_v42 = vpop.eup %1287  ;;  %v407_v43 = vxor.u32 2147483648, %v1286_v41 }
  0x5e   : > { %v404_v11 = vxor.u32 2147483648, %v1288_v42 }
  0x5f   : > { %v408_v44 = vsel %vm406_vm9, %v407_v43, %v1288_v42  ;;  %v511_v45 = vsel %vm509_vm10, %v407_v43, %v1288_v42  ;;  %v572_v42 = vld [vmem:[%s1524_s1 + $0x18] sm:$0xff] }
  0x60   : > { %v405_v46 = vsel %vm403_vm11, %v1286_v41, %v404_v11  ;;  %v508_v47 = vsel %vm506_vm12, %v1286_v41, %v404_v11  ;;  %v571_v41 = vld [vmem:[%s1524_s1 + $0x10] sm:$0xff] }
  0x61   : > { %v409_v48 = vsel %vm402_vm13, %v405_v46, %v408_v44  ;;  %v512_v49 = vsel %vm505_vm14, %v508_v47, %v511_v45 }
  0x62   : > { %v410_v50 = vsel %vm399_vm15, nan, %v409_v48  ;;  %v513_v51 = vsel %vm399_vm15, nan, %v512_v49 }
  0x63   : > { %v515_v52 = vcombine.high %v410_v50, %v410_v50  ;;  %v524_v53 = vmul.f32 2.0, %v410_v50  ;;  %v526_v54 = vmul.f32 %v513_v51, %v513_v51  ;;  %v527_v55 = vmul.f32 %v410_v50, %v410_v50  ;;  %517 = vst [vmem:[#allocation2 + $0x10] sm:$0x7] %v410_v50  ;;  %522 = vst [vmem:[#allocation2 + $0x20] sm:$0x7] %v513_v51 }
  0x64   : > { %v520_v56 = vcombine.high %v513_v51, %v513_v51 }
  0x65   : > { %518 = vst [vmem:[#allocation2 + $0x18] sm:$0x7] %v515_v52  ;;  %v525_v57 = vmul.f32 %v524_v53, %v513_v51  ;;  %v528_v58 = vsub.f32 %v526_v54, %v527_v55 }
  0x66   : > { %523 = vst [vmem:[#allocation2 + $0x28] sm:$0x7] %v520_v56 }
  0x67   : > { %532 = vst [vmem:[#allocation2 + $0x30] sm:$0x7] %v525_v57  ;;  %537 = vst [vmem:[#allocation2 + $0x40] sm:$0x7] %v528_v58  ;;  %v530_v6 = vcombine.high %v525_v57, %v525_v57  ;;  %v535_v59 = vcombine.high %v528_v58, %v528_v58  ;;  %v539_v60 = vmul.f32 2.0, %v525_v57  ;;  %v541_v61 = vmul.f32 %v528_v58, %v528_v58 }
  0x68   : > { %v542_v62 = vmul.f32 %v525_v57, %v525_v57 }
  0x69   : > { %533 = vst [vmem:[#allocation2 + $0x38] sm:$0x7] %v530_v6  ;;  %538 = vst [vmem:[#allocation2 + $0x48] sm:$0x7] %v535_v59  ;;  %v540_v1 = vmul.f32 %v539_v60, %v528_v58 }
  0x6a   : > { %v575_v3 = vld [vmem:[#allocation2 + $0x10] sm:$0xff]  ;;  %v543_v4 = vsub.f32 %v541_v61, %v542_v62  ;;  %v577_v15 = vld [vmem:[#allocation2 + $0x20] sm:$0xff] }
  0x6b   : > { %v545_v5 = vcombine.high %v540_v1, %v540_v1  ;;  %547 = vst [vmem:[#allocation2 + $0x50] sm:$0x7] %v540_v1  ;;  %v554_v7 = vmul.f32 2.0, %v540_v1  ;;  %v557_v8 = vmul.f32 %v540_v1, %v540_v1  ;;  %v1224_v10 = vpack.c.bf16 %v575_v3, %v573_v63 }
  0x6c   : > { %v576_v9 = vld [vmem:[#allocation2 + $0x18] sm:$0xff]  ;;  %v550_v12 = vcombine.high %v543_v4, %v543_v4  ;;  %552 = vst [vmem:[#allocation2 + $0x60] sm:$0x7] %v543_v4  ;;  %v556_v13 = vmul.f32 %v543_v4, %v543_v4 }
  0x6d   : > { %v1222_v14 = vpack.c.bf16 %v576_v9, %v574_v2  ;;  %548 = vst [vmem:[#allocation2 + $0x58] sm:$0x7] %v545_v5  ;;  %v555_v16 = vmul.f32 %v554_v7, %v543_v4  ;;  %v578_v17 = vld [vmem:[#allocation2 + $0x28] sm:$0xff] }
  0x6e   : > { %v579_v18 = vld [vmem:[#allocation2 + $0x30] sm:$0xff]  ;;  %553 = vst [vmem:[#allocation2 + $0x68] sm:$0x7] %v550_v12  ;;  %v558_v19 = vsub.f32 %v556_v13, %v557_v8  ;;  %v581_v25 = vld [vmem:[#allocation2 + $0x40] sm:$0xff] }
  0x6f   : > { %1223 = vmatprep.subr.bf16.mxu0 %v1222_v14  ;;  %v560_v20 = vcombine.high %v555_v16, %v555_v16  ;;  %562 = vst [vmem:[#allocation2 + $0x70] sm:$0x7] %v555_v16  ;;  %v1228_v22 = vpack.c.bf16 %v579_v18, %v577_v15 }
  0x70   : > { %1225 = vmatpush1.bf16.msra.mxu0 %v1224_v10  ;;  %v580_v21 = vld [vmem:[#allocation2 + $0x38] sm:$0xff]  ;;  %v565_v23 = vcombine.high %v558_v19, %v558_v19  ;;  %567 = vst [vmem:[#allocation2 + $0x80] sm:$0x7] %v558_v19  ;;  %v582_v26 = vld [vmem:[#allocation2 + $0x48] sm:$0xff] }
  0x71   : > { %v1226_v24 = vpack.c.bf16 %v580_v21, %v578_v17  ;;  %563 = vst [vmem:[#allocation2 + $0x78] sm:$0x7] %v560_v20  ;;  %v733_v20 = vld [vmem:[%s1526_s3] sm:$0xff]  ;;  %v734_v21 = vld [vmem:[%s1526_s3 + $0x8] sm:$0xff] }
  0x72   : > { %v583_v27 = vld [vmem:[#allocation2 + $0x50] sm:$0xff]  ;;  %568 = vst [vmem:[#allocation2 + $0x88] sm:$0x7] %v565_v23  ;;  %v736_v23 = vld [vmem:[%s1526_s3 + $0x18] sm:$0xff] }
  0x73   : > { %1227 = vmatprep.subr.bf16.mxu0 %v1226_v24  ;;  %v1232_v29 = vpack.c.bf16 %v583_v27, %v581_v25  ;;  %v585_v31 = vld [vmem:[#allocation2 + $0x60] sm:$0xff] }
  0x74   : > { %1229 = vmatpush1.bf16.msra.mxu0 %v1228_v22  ;;  %v584_v28 = vld [vmem:[#allocation2 + $0x58] sm:$0xff]  ;;  %v735_v22 = vld [vmem:[%s1526_s3 + $0x10] sm:$0xff] }
  0x75   : > { %v1230_v30 = vpack.c.bf16 %v584_v28, %v582_v26  ;;  %v586_v32 = vld [vmem:[#allocation2 + $0x68] sm:$0xff] }
  0x76   : > { %v587_v33 = vld [vmem:[#allocation2 + $0x70] sm:$0xff] }
  0x77   : > { %1231 = vmatprep.subr.bf16.mxu0 %v1230_v30  ;;  %v1236_v35 = vpack.c.bf16 %v587_v33, %v585_v31  ;;  %v589_v38 = vld [vmem:[#allocation2 + $0x80] sm:$0xff] }
  0x78   : > { %1233 = vmatpush1.bf16.msra.mxu0 %v1232_v29  ;;  %v588_v34 = vld [vmem:[#allocation2 + $0x78] sm:$0xff] }
  0x79   : > { %v1234_v36 = vpack.c.bf16 %v588_v34, %v586_v32  ;;  %v590_v37 = vld [vmem:[#allocation2 + $0x88] sm:$0xff] }
  0x7b   : > { %1235 = vmatprep.subr.bf16.mxu0 %v1234_v36 }
  0x7c   : > { %1237 = vmatpush1.bf16.msra.mxu0 %v1236_v35 }
  0x7d   : > { %644 = vmatprep.subr.mxu0 %v590_v37 }
  0x80   : > { %645 = vmatpush1.msra.mxu0 %v589_v38 }
  0x81   : > { %1197 = vmatmul.mubr.msk.f32.vlgmr.msra.gmra.mrb[0].mxu0 %vm615_vm0, %v569_v39 }
  0x82   : > { %698 = vmatprep.mubr.f32.mxu0 %v1305_v0 }
  0x85   : > { %1198 = vmatmul.mubr.msk.f32.gmra.mrb[2].mxu0 %vm615_vm0, %v570_v40 }
  0x86   : > { %704 = vmatprep.mubr.f32.mxu0 %v1305_v0 }
  0x87   : > { %v598_v43 = vpop.permute.xlu0 %597  ;;  %v608_v52 = vpop.permute.xlu1 %607 }
  0x89   : > { %1199 = vmatmul.mubr.msk.f32.gmra.mrb[4].mxu0 %vm615_vm0, %v571_v41 }
  0x8a   : > { %710 = vmatprep.mubr.f32.mxu0 %v1305_v0 }
  0x8b   : > { %v603_v47 = vpop.permute.xlu0 %602  ;;  %v613_v2 = vpop.permute.xlu1 %612 }
  0x8d   : > { %1200 = vmatmul.mubr.msk.f32.gmra.mrb[6].mxu0 %vm615_vm0, %v572_v42 }
  0x8e   : > { %1100 = vmatprep.mubr.f32.mxu0 %v1305_v0 }
  0x8f   : > { %v744_v24 = vpop.permute.xlu0 %743  ;;  %v749_v29 = vpop.permute.xlu1 %748 }
  0x93   : > { %v754_v37 = vpop.permute.xlu0 %753 }
 0x154   : > { %v694_v11 = vpop.f32.mrb[0].mxu0 }
 0x155   : > { %v695_v44 = vadd.f32 %v694_v11, %v598_v43  ;;  %v696_v45 = vpop.f32.mrb[1].mxu0 }
 0x156   : > { %v697_v46 = vadd.f32 %v696_v45, %v598_v43 }
 0x157   : > { %v717_v49 = vmul.f32 0.01, %v695_v44 }
 0x158   : > { %v700_v48 = vpop.f32.mrb[2].mxu0  ;;  %v718_v53 = vmul.f32 0.01, %v697_v46 }
 0x159   : > { %v701_v50 = vadd.f32 %v700_v48, %v603_v47  ;;  %v702_v51 = vpop.f32.mrb[3].mxu0  ;;  %v725_v58 = vmax.f32 %v695_v44, %v717_v49 }
 0x15a   : > { %v703_v54 = vadd.f32 %v702_v51, %v603_v47  ;;  %v726_v62 = vmax.f32 %v697_v46, %v718_v53  ;;  %v759_v47 = vpop.permute.xlu1 %758 }
 0x15b   : > { %v719_v55 = vmul.f32 0.01, %v701_v50 }
 0x15c   : > { %v720_v56 = vmul.f32 0.01, %v703_v54  ;;  %v706_v57 = vpop.f32.mrb[4].mxu0 }
 0x15d   : > { %v727_v6 = vmax.f32 %v701_v50, %v719_v55  ;;  %v707_v59 = vadd.f32 %v706_v57, %v608_v52  ;;  %v708_v60 = vpop.f32.mrb[5].mxu0 }
 0x15e   : > { %v709_v61 = vadd.f32 %v708_v60, %v608_v52  ;;  %v728_v63 = vmax.f32 %v703_v54, %v720_v56 }
 0x15f   : > { %v1240_v1 = vpack.c.bf16 %v727_v6, %v725_v58  ;;  %v721_v5 = vmul.f32 0.01, %v707_v59 }
 0x160   : > { %v712_v3 = vpop.f32.mrb[6].mxu0  ;;  %v1238_v4 = vpack.c.bf16 %v728_v63, %v726_v62  ;;  %v722_v9 = vmul.f32 0.01, %v709_v61  ;;  %v1205_v62 = vld [vmem:[%s1526_s3 + $0x20] sm:$0xff]  ;;  %v1206_v63 = vld [vmem:[%s1526_s3 + $0x28] sm:$0xff] }
 0x161   : > { %v713_v7 = vadd.f32 %v712_v3, %v613_v2  ;;  %v714_v8 = vpop.f32.mrb[7].mxu0  ;;  %v729_v14 = vmax.f32 %v707_v59, %v721_v5  ;;  %v892_v3 = vpop.permute.xlu0 %891 }
 0x162   : > { %v715_v10 = vadd.f32 %v714_v8, %v613_v2  ;;  %1239 = vmatprep.subr.bf16.mxu1 %v1238_v4  ;;  %v730_v16 = vmax.f32 %v709_v61, %v722_v9  ;;  %v1208_v2 = vld [vmem:[%s1526_s3 + $0x38] sm:$0xff]  ;;  %v897_v9 = vpop.permute.xlu1 %896 }
 0x163   : > { %v723_v12 = vmul.f32 0.01, %v713_v7  ;;  %1241 = vmatpush1.bf16.msra.mxu1 %v1240_v1  ;;  %v1207_v1 = vld [vmem:[%s1526_s3 + $0x30] sm:$0xff] }
 0x164   : > { %v724_v13 = vmul.f32 0.01, %v715_v10 }
 0x165   : > { %v731_v15 = vmax.f32 %v713_v7, %v723_v12 }
 0x166   : > { %v732_v17 = vmax.f32 %v715_v10, %v724_v13 }
 0x167   : > { %v1244_v18 = vpack.c.bf16 %v731_v15, %v729_v14 }
 0x168   : > { %v1242_v19 = vpack.c.bf16 %v732_v17, %v730_v16 }
 0x16a   : > { %1243 = vmatprep.subr.bf16.mxu1 %v1242_v19 }
 0x16b   : > { %1245 = vmatpush1.bf16.msra.mxu1 %v1244_v18 }
 0x16e   : > { %1201 = vmatmul.mubr.msk.f32.vlgmr.msra.gmra.mrb[0].mxu1 %vm761_vm1, %v733_v20 }
 0x16f   : > { %844 = vmatprep.mubr.f32.mxu1 %v1305_v0 }
 0x172   : > { %1202 = vmatmul.mubr.msk.f32.gmra.mrb[2].mxu1 %vm761_vm1, %v734_v21 }
 0x173   : > { %850 = vmatprep.mubr.f32.mxu1 %v1305_v0 }
 0x176   : > { %1203 = vmatmul.mubr.msk.f32.gmra.mrb[4].mxu1 %vm761_vm1, %v735_v22 }
 0x177   : > { %856 = vmatprep.mubr.f32.mxu1 %v1305_v0 }
 0x17a   : > { %1204 = vmatmul.mubr.msk.f32.gmra.mrb[6].mxu1 %vm761_vm1, %v736_v23 }
 0x17b   : > { %985 = vmatprep.mubr.f32.mxu1 %v1305_v0 }
 0x241   : > { %v840_v25 = vpop.f32.mrb[0].mxu1 }
 0x242   : > { %v841_v26 = vadd.f32 %v840_v25, %v744_v24  ;;  %v842_v27 = vpop.f32.mrb[1].mxu1 }
 0x243   : > { %v843_v28 = vadd.f32 %v842_v27, %v744_v24 }
 0x244   : > { %v863_v31 = vmul.f32 0.01, %v841_v26 }
 0x245   : > { %v846_v30 = vpop.f32.mrb[2].mxu1  ;;  %v864_v34 = vmul.f32 0.01, %v843_v28 }
 0x246   : > { %v847_v32 = vadd.f32 %v846_v30, %v749_v29  ;;  %v848_v33 = vpop.f32.mrb[3].mxu1  ;;  %v871_v40 = vmax.f32 %v841_v26, %v863_v31 }
 0x247   : > { %v849_v35 = vadd.f32 %v848_v33, %v749_v29  ;;  %v872_v11 = vmax.f32 %v843_v28, %v864_v34  ;;  %v907_v28 = vpop.permute.xlu1 %906 }
 0x248   : > { %v865_v36 = vmul.f32 0.01, %v847_v32 }
 0x249   : > { %v866_v38 = vmul.f32 0.01, %v849_v35  ;;  %v852_v39 = vpop.f32.mrb[4].mxu1 }
 0x24a   : > { %v873_v41 = vmax.f32 %v847_v32, %v865_v36  ;;  %v853_v42 = vadd.f32 %v852_v39, %v754_v37  ;;  %v854_v43 = vpop.f32.mrb[5].mxu1 }
 0x24b   : > { %v874_v44 = vmax.f32 %v849_v35, %v866_v38  ;;  %v855_v45 = vadd.f32 %v854_v43, %v754_v37 }
 0x24c   : > { %v1248_v46 = vpack.c.bf16 %v873_v41, %v871_v40  ;;  %v867_v50 = vmul.f32 0.01, %v853_v42 }
 0x24d   : > { %v858_v48 = vpop.f32.mrb[6].mxu1  ;;  %v1246_v49 = vpack.c.bf16 %v874_v44, %v872_v11  ;;  %v868_v53 = vmul.f32 0.01, %v855_v45  ;;  %v1026_v11 = vld [vmem:[%s1528_s5] sm:$0x7] }
 0x24e   : > { %v859_v51 = vadd.f32 %v858_v48, %v759_v47  ;;  %v860_v52 = vpop.f32.mrb[7].mxu1  ;;  %v875_v57 = vmax.f32 %v853_v42, %v867_v50 }
 0x24f   : > { %v861_v54 = vadd.f32 %v860_v52, %v759_v47  ;;  %1247 = vmatprep.subr.bf16.mxu1 %v1246_v49  ;;  %v876_v6 = vmax.f32 %v855_v45, %v868_v53 }
 0x250   : > { %v869_v55 = vmul.f32 0.01, %v859_v51  ;;  %1249 = vmatpush1.bf16.msra.mxu1 %v1248_v46 }
 0x251   : > { %v870_v56 = vmul.f32 0.01, %v861_v54 }
 0x252   : > { %v877_v58 = vmax.f32 %v859_v51, %v869_v55 }
 0x253   : > { %v878_v59 = vmax.f32 %v861_v54, %v870_v56 }
 0x254   : > { %v1252_v60 = vpack.c.bf16 %v877_v58, %v875_v57 }
 0x255   : > { %v1250_v61 = vpack.c.bf16 %v878_v59, %v876_v6 }
 0x257   : > { %1251 = vmatprep.subr.bf16.mxu1 %v1250_v61 }
 0x258   : > { %1253 = vmatpush1.bf16.msra.mxu1 %v1252_v60 }
 0x25b   : > { %1213 = vmatmul.mubr.msk.f32.vlgmr.msra.gmra.mrb[8].mxu1 %vm761_vm1, %v1205_v62 }
 0x25c   : > { %991 = vmatprep.mubr.f32.mxu1 %v1305_v0 }
 0x25f   : > { %1214 = vmatmul.mubr.msk.f32.gmra.mrb[10].mxu1 %vm761_vm1, %v1206_v63 }
 0x260   : > { %997 = vmatprep.mubr.f32.mxu1 %v1305_v0 }
 0x263   : > { %1215 = vmatmul.mubr.msk.f32.gmra.mrb[12].mxu1 %vm761_vm1, %v1207_v1 }
 0x264   : > { %1003 = vmatprep.mubr.f32.mxu1 %v1305_v0  ;;  %v902_v0 = vpop.permute.xlu0 %901 }
 0x267   : > { %1216 = vmatmul.mubr.msk.f32.gmra.mrb[14].mxu1 %vm761_vm1, %v1208_v2 }
 0x268   : > { %v1031_v44 = vpop.permute.xlu0 %1030 }
 0x32e   : > { %v987_v4 = vpop.f32.mrb[8].mxu1 }
 0x32f   : > { %v988_v5 = vadd.f32 %v987_v4, %v892_v3  ;;  %v989_v7 = vpop.f32.mrb[9].mxu1 }
 0x330   : > { %v990_v8 = vadd.f32 %v989_v7, %v892_v3 }
 0x331   : > { %v1010_v12 = vmul.f32 0.01, %v988_v5 }
 0x332   : > { %v993_v10 = vpop.f32.mrb[10].mxu1  ;;  %v1011_v15 = vmul.f32 0.01, %v990_v8 }
 0x333   : > { %v994_v13 = vadd.f32 %v993_v10, %v897_v9  ;;  %v995_v14 = vpop.f32.mrb[11].mxu1  ;;  %v1018_v20 = vmax.f32 %v988_v5, %v1010_v12 }
 0x334   : > { %v996_v16 = vadd.f32 %v995_v14, %v897_v9  ;;  %v1019_v24 = vmax.f32 %v990_v8, %v1011_v15 }
 0x335   : > { %v1012_v17 = vmul.f32 0.01, %v994_v13 }
 0x336   : > { %v1013_v18 = vmul.f32 0.01, %v996_v16  ;;  %v999_v19 = vpop.f32.mrb[12].mxu1 }
 0x337   : > { %v1020_v21 = vmax.f32 %v994_v13, %v1012_v17  ;;  %v1000_v22 = vadd.f32 %v999_v19, %v902_v0  ;;  %v1001_v23 = vpop.f32.mrb[13].mxu1 }
 0x338   : > { %v1021_v25 = vmax.f32 %v996_v16, %v1013_v18  ;;  %v1002_v26 = vadd.f32 %v1001_v23, %v902_v0 }
 0x339   : > { %v1256_v27 = vpack.c.bf16 %v1020_v21, %v1018_v20  ;;  %v1014_v31 = vmul.f32 0.01, %v1000_v22 }
 0x33a   : > { %v1005_v29 = vpop.f32.mrb[14].mxu1  ;;  %v1254_v30 = vpack.c.bf16 %v1021_v25, %v1019_v24  ;;  %v1015_v34 = vmul.f32 0.01, %v1002_v26 }
 0x33b   : > { %v1006_v32 = vadd.f32 %v1005_v29, %v907_v28  ;;  %v1007_v33 = vpop.f32.mrb[15].mxu1  ;;  %v1022_v38 = vmax.f32 %v1000_v22, %v1014_v31 }
 0x33c   : > { %v1008_v35 = vadd.f32 %v1007_v33, %v907_v28  ;;  %1255 = vmatprep.subr.bf16.mxu0 %v1254_v30  ;;  %v1023_v40 = vmax.f32 %v1002_v26, %v1015_v34 }
 0x33d   : > { %v1016_v36 = vmul.f32 0.01, %v1006_v32  ;;  %1257 = vmatpush1.bf16.msra.mxu0 %v1256_v27 }
 0x33e   : > { %v1017_v37 = vmul.f32 0.01, %v1008_v35 }
 0x33f   : > { %v1024_v39 = vmax.f32 %v1006_v32, %v1016_v36 }
 0x340   : > { %v1025_v41 = vmax.f32 %v1008_v35, %v1017_v37 }
 0x341   : > { %v1260_v42 = vpack.c.bf16 %v1024_v39, %v1022_v38 }
 0x342   : > { %v1258_v43 = vpack.c.bf16 %v1025_v41, %v1023_v40 }
 0x344   : > { %1259 = vmatprep.subr.bf16.mxu0 %v1258_v43 }
 0x345   : > { %1261 = vmatpush1.bf16.msra.mxu0 %v1260_v42 }
 0x348   : > { %1217 = vmatmul.mubr.msk.f32.vlgmr.msra.gmra.mrb[8].mxu0 %vm761_vm1, %v1026_v11 }
 0x41b   : > { %v1102_v45 = vpop.f32.mrb[8].mxu0 }
 0x41c   : > { %v1103_v46 = vadd.f32 %v1102_v45, %v1031_v44  ;;  %v1104_v47 = vpop.f32.mrb[9].mxu0 }
 0x41d   : > { %v1105_v48 = vadd.f32 %v1104_v47, %v1031_v44 }
 0x41e   : > { %v1218_v49 = vmul.f32 -1.442695, %v1103_v46 }
 0x41f   : > { %v1219_v50 = vmul.f32 -1.442695, %v1105_v48 }
 0x420   : > { %1289 = vpow2.f32 %v1218_v49 }
 0x421   : > { %1291 = vpow2.f32 %v1219_v50 }
 0x42a   : > { %v1290_v51 = vpop.eup %1289 }
 0x42b   : > { %v1292_v52 = vpop.eup %1291  ;;  %v1113_v53 = vadd.f32 1.0, %v1290_v51 }
 0x42c   : > { %v1114_v54 = vadd.f32 1.0, %v1292_v52 }
 0x42d   : > { %1293 = vrcp.f32 %v1113_v53 }
 0x42e   : > { %1295 = vrcp.f32 %v1114_v54 }
 0x437   : > { %v1294_v55 = vpop.eup %1293 }
 0x438   : > { %v1296_v56 = vpop.eup %1295 }
 0x439   : > { %v1121_v57 = vcombine.low %v1294_v55, %v1296_v56 }
 0x43b   : > { %1123 = vst [vmem:[%s280_s22] sm:$0x77] %v1121_v57 }
 0x43c PF: > { %s17_s24 = sadd.s32 1, %s1303_s24  }
 0x43d   : > { %p14_p4 = scmp.ge.s32.totalorder %s17_s24, 10  }
 0x43f   :  { %16 = sbr.rel (!%p14_p4) target bundleno = 1 (0x1), region = 80 }

</bundles_post_ra>
